<compile_context>
chip_gen: v6e
topology: v6e:2x2x1
jax: 0.10.0
libtpu: 0.0.40
codegen_flags: <defaults>
</compile_context>

<pallas_src>
import functools

import jax
import jax.numpy as jnp
from jax import lax
from jax.experimental import pallas as pl
from jax.experimental.pallas import tpu as pltpu


# ----------------------------- Pallas kernel --------------------------------
def _conv_block_kernel(p_ref, w_ref, b_ref, o_ref):
    # p_ref: (K, TM)  bf16 im2col patch tile (lane dim = output pixels, 128-dense)
    # w_ref: (Cout, K) bf16 spectral-normalized weight   (resident across grid steps)
    # b_ref: (Cout, 1) f32 bias                           (resident across grid steps)
    # o_ref: (Cout, TM) f32 output tile (lane-dense, unmasked stores)
    acc = jnp.dot(w_ref[...], p_ref[...], preferred_element_type=jnp.float32)
    acc = acc + b_ref[...]                                # f32 bias broadcast over lanes
    o_ref[...] = jnp.where(acc >= 0.0, acc, 0.1 * acc).astype(o_ref.dtype)


def _conv_block_matmul(patches_t, w_t, bias, tm):
    # patches_t: (K, Mpad) bf16, w_t: (Cout, K) bf16, bias: (Cout,) f32.  Mpad % tm == 0.
    K, m_pad = patches_t.shape
    Cout = w_t.shape[0]
    bias2d = bias.reshape(Cout, 1)
    grid = (m_pad // tm,)
    return pl.pallas_call(
        _conv_block_kernel,
        out_shape=jax.ShapeDtypeStruct((Cout, m_pad), jnp.float32),
        grid_spec=pltpu.PrefetchScalarGridSpec(
            num_scalar_prefetch=0,
            grid=grid,
            in_specs=[
                pl.BlockSpec((K, tm), lambda i: (0, i)),      # streamed patch tiles
                pl.BlockSpec((Cout, K), lambda i: (0, 0)),    # weight stays resident
                pl.BlockSpec((Cout, 1), lambda i: (0, 0)),    # bias stays resident
            ],
            out_specs=pl.BlockSpec((Cout, tm), lambda i: (0, i)),
        ),
        compiler_params=pltpu.CompilerParams(
            dimension_semantics=("parallel",),                # megacore split on v7x
        ),
    )(patches_t, w_t, bias2d)


# ----------------------------- glue (spectral norm, layout) ------------------
def _round_up(x, m):
    return (x + m - 1) // m * m


def _l2_normalize(v, eps=1e-12):
    return v / (jnp.sqrt(jnp.sum(v * v)) + eps)


def spectral_normalize(weight, u0, n_power_iterations=1):
    # weight: (Cout, Cin, KH, KW), u0: (Cout,)  -- mirrors torch.nn.utils.spectral_norm
    if n_power_iterations < 1:
        raise ValueError("n_power_iterations must be >= 1")
    Cout = weight.shape[0]
    w_mat = weight.reshape(Cout, -1)
    u = _l2_normalize(u0)
    v = _l2_normalize(w_mat.T @ u)
    for _ in range(n_power_iterations - 1):
        u = _l2_normalize(w_mat @ v)
        v = _l2_normalize(w_mat.T @ u)
    u = _l2_normalize(w_mat @ v)
    sigma = u @ (w_mat @ v)
    return weight / sigma


def conv2d_block_forward(x, weight, bias, u0,
                         kernel_size=(3, 2), stride=(2, 1),
                         tile_m=1024, compute_dtype=jnp.bfloat16):
    """Forward of Conv2DBlock. x: (N, Cin, H, W) -> (N, Cout, Hout, Wout) float32."""
    w_sn = spectral_normalize(weight, u0)
    Cout, Cin, KH, KW = w_sn.shape
    assert (KH, KW) == tuple(kernel_size)
    SH, SW = stride
    N, Cin_x, H, W = x.shape
    assert Cin_x == Cin
    Hout = (H - KH) // SH + 1
    Wout = (W - KW) // SW + 1
    M = N * Hout * Wout
    K = Cin * KH * KW

    # K-major patches (K, M): one cheap leading-axis permute of the input, then strided
    # slices + concat (no transpose of the large patch tensor).
    x_cnhw = jnp.transpose(x, (1, 0, 2, 3))               # (Cin, N, H, W)
    cols = []
    for kh in range(KH):
        for kw in range(KW):
            sl = x_cnhw[:, :,
                        kh:kh + SH * (Hout - 1) + 1:SH,
                        kw:kw + SW * (Wout - 1) + 1:SW]    # (Cin, N, Hout, Wout)
            cols.append(sl.reshape(Cin, M))
    patches_t = jnp.concatenate(cols, axis=0)             # (K, M), k = (kh, kw, ci)

    # Permute the tiny weight to match the (kh, kw, ci) order of K (free).
    w_t = jnp.transpose(w_sn, (0, 2, 3, 1)).reshape(Cout, K)   # (Cout, K)

    # bf16 operands, f32 accumulation in the kernel.
    patches_t = patches_t.astype(compute_dtype)
    w_t = w_t.astype(compute_dtype)

    # Pad M (lane dim) to a 128-multiple tile so stores are lane-dense and the grid is clean.
    m_pad128 = _round_up(M, 128)
    tm = min(tile_m, m_pad128)
    m_pad = _round_up(M, tm)
    if m_pad != M:
        patches_t = jnp.pad(patches_t, ((0, 0), (0, m_pad - M)))

    out_t = _conv_block_matmul(patches_t, w_t, bias.astype(jnp.float32), tm)  # (Cout, m_pad)
    out_t = out_t[:, :M].reshape(Cout, N, Hout, Wout)
    # Leading-axis swap back to NCHW (much cheaper than a minor-dim relayout); drop this if
    # downstream consumers can take channel-first-transposed layouts directly.
    return jnp.transpose(out_t, (1, 0, 2, 3))


# ----------------------------- reference (pure JAX, f32) ---------------------
def _reference(x, weight, bias, u0, kernel_size=(3, 2), stride=(2, 1)):
    w_sn = spectral_normalize(weight, u0)
    out = lax.conv_general_dilated(
        x, w_sn, window_strides=stride, padding="VALID",
        dimension_numbers=("NCHW", "OIHW", "NCHW"))
    out = out + bias.reshape(1, -1, 1, 1)
    return jnp.where(out >= 0.0, out, 0.1 * out)


# ----------------------------- main ------------------------------------------
if __name__ == "__main__":
    key = jax.random.PRNGKey(0)
    k_x, k_w, k_u = jax.random.split(key, 3)

    # Small shapes consistent with the module.
    N, Cin, H, W = 2, 4, 16, 16
    Cout = 8
    KH, KW = 3, 2
    SH, SW = 2, 1

    x = jax.random.normal(k_x, (N, Cin, H, W), dtype=jnp.float32)

    # Deterministic parameter init (xavier_uniform_ for weight, zeros for bias).
    fan_in = Cin * KH * KW
    fan_out = Cout * KH * KW
    bound = jnp.sqrt(6.0 / (fan_in + fan_out))
    weight = jax.random.uniform(k_w, (Cout, Cin, KH, KW),
                                minval=-bound, maxval=bound, dtype=jnp.float32)
    bias = jnp.zeros((Cout,), dtype=jnp.float32)
    # spectral_norm's power-iteration vector u (deterministic init).
    u0 = jax.random.normal(k_u, (Cout,), dtype=jnp.float32)

    fwd = jax.jit(functools.partial(conv2d_block_forward,
                                    kernel_size=(KH, KW), stride=(SH, SW)))
    out = fwd(x, weight, bias, u0)
    out = jax.block_until_ready(out)

    ref = _reference(x, weight, bias, u0, kernel_size=(KH, KW), stride=(SH, SW))
    assert out.shape == ref.shape == (N, Cout, (H - KH) // SH + 1, (W - KW) // SW + 1)
    # Tolerance loosened for bf16 operands (accumulation/epilogue stay f32).
    max_err = jnp.max(jnp.abs(out - ref))
    assert jnp.allclose(out, ref, atol=3e-2, rtol=3e-2), f"max abs err {max_err}"

    print("KERNEL_OK")
</pallas_src>

<mosaic_0001>
module attributes {stable_mosaic.version = 11 : i64} {
  func.func @_conv_block_kernel(%arg0: i32, %arg1: memref<24x256xbf16, #tpu.memory_space<vmem>>, %arg2: memref<8x24xbf16, #tpu.memory_space<vmem>>, %arg3: memref<8x1xf32, #tpu.memory_space<vmem>>, %arg4: memref<8x256xf32, #tpu.memory_space<vmem>>) attributes {dimension_semantics = [#tpu.dimension_semantics<parallel>], iteration_bounds = array<i64: 1>, scalar_prefetch = 0 : i64, scratch_operands = 0 : i64, tpu.core_type = #tpu.core_type<tc>, window_params = [{transform_indices = @transform_0, window_bounds = array<i64: 24, 256>}, {pipeline_mode = #tpu.pipeline_mode<synchronous>, transform_indices = @transform_1, window_bounds = array<i64: 8, 24>}, {pipeline_mode = #tpu.pipeline_mode<synchronous>, transform_indices = @transform_2, window_bounds = array<i64: 8, 1>}, {transform_indices = @transform_3, window_bounds = array<i64: 8, 256>}]} {
    %c0 = arith.constant 0 : index
    %c0_0 = arith.constant 0 : index
    %0 = vector.load %arg2[%c0, %c0_0] : memref<8x24xbf16, #tpu.memory_space<vmem>>, vector<8x24xbf16>
    %c0_1 = arith.constant 0 : index
    %c0_2 = arith.constant 0 : index
    %1 = vector.load %arg1[%c0_1, %c0_2] : memref<24x256xbf16, #tpu.memory_space<vmem>>, vector<24x256xbf16>
    %cst = arith.constant dense<0.000000e+00> : vector<8x256xf32>
    %2 = tpu.matmul %0, %1, %cst {dimension_numbers = #tpu.dot_dimension_numbers<[1], [0], [0], [1], [0, 0, 1, 1], [], []>} : vector<8x24xbf16>, vector<24x256xbf16>, vector<8x256xf32> -> vector<8x256xf32>
    %c0_3 = arith.constant 0 : index
    %c0_4 = arith.constant 0 : index
    %3 = vector.load %arg3[%c0_3, %c0_4] : memref<8x1xf32, #tpu.memory_space<vmem>>, vector<8x1xf32>
    %4 = vector.broadcast %3 : vector<8x1xf32> to vector<8x256xf32>
    %5 = arith.addf %2, %4 : vector<8x256xf32>
    %cst_5 = arith.constant 0.000000e+00 : f32
    %6 = vector.broadcast %cst_5 : f32 to vector<8x256xf32>
    %7 = arith.cmpf oge, %5, %6 : vector<8x256xf32>
    %cst_6 = arith.constant 1.000000e-01 : f32
    %8 = vector.broadcast %cst_6 : f32 to vector<8x256xf32>
    %9 = arith.mulf %8, %5 : vector<8x256xf32>
    %10 = arith.select %7, %5, %9 : vector<8x256xi1>, vector<8x256xf32>
    %c0_7 = arith.constant 0 : index
    %c0_8 = arith.constant 0 : index
    %11 = vector.load %arg4[%c0_7, %c0_8] : memref<8x256xf32, #tpu.memory_space<vmem>>, vector<8x256xf32>
    tpu.vector_store %arg4[%c0_7, %c0_8], %10 {strides = array<i32>} : memref<8x256xf32, #tpu.memory_space<vmem>>, vector<8x256xf32>,
    return
  }
  func.func @transform_0(%arg0: i32) -> (i32, i32) {
    %c0_i32 = arith.constant 0 : i32
    %c0_i32_0 = arith.constant 0 : i32
    return %c0_i32, %arg0 : i32, i32
  }
  func.func @transform_1(%arg0: i32) -> (i32, i32) {
    %c0_i32 = arith.constant 0 : i32
    %c0_i32_0 = arith.constant 0 : i32
    %c0_i32_1 = arith.constant 0 : i32
    return %c0_i32, %c0_i32_0 : i32, i32
  }
  func.func @transform_2(%arg0: i32) -> (i32, i32) {
    %c0_i32 = arith.constant 0 : i32
    %c0_i32_0 = arith.constant 0 : i32
    %c0_i32_1 = arith.constant 0 : i32
    return %c0_i32, %c0_i32_0 : i32, i32
  }
  func.func @transform_3(%arg0: i32) -> (i32, i32) {
    %c0_i32 = arith.constant 0 : i32
    %c0_i32_0 = arith.constant 0 : i32
    return %c0_i32, %arg0 : i32, i32
  }
}

</mosaic_0001>

<bundles_post_ra>
// kernel: conv2d_block_forward.1
= control target key start
LH: loop header
LB: loop body
LE: loop exit
PB: predicated region body
PF: predicated region fallthrough
CT: control target
= control target key end

     0   :  { %vm44_vm0 = vcmask 1043456   ;;  %v117_v1 = vmov 0   ;;  %vm40_vm1 = vcmask 195584   ;;  %s159_s0 = inlined_call_operand.vmem [shape: bf16[24,256], index: 0, kind: input, shape index: {}]   ;;  %s160_s2 = inlined_call_operand.vmem [shape: f32[8,1], index: 2, kind: input, shape index: {}]   ;;  %s161_s1 = inlined_call_operand.vmem [shape: bf16[8,24], index: 1, kind: input, shape index: {}]   ;;  %s162_s3 = inlined_call_operand.vmem [shape: f32[8,256], index: 3, kind: output, shape index: {}]  }
   0x1   :  { %v18_v0 = vld [vmem:[%s159_s0 + $0x10] sm:$0xff]  ;;  %83 = vmatprep.mubr.bf16.mxu0 %v117_v1  ;;  %111 = vset.pattern.permute.xlu0 %v117_v1  ;;  %v114_v4 = vld [vmem:[%s159_s0 + $0x4] ss:$8 sps:$4 sm:$0xff]   ;;  %v116_v7 = vld [vmem:[%s159_s0] ss:$8 sps:$4 sm:$0xff]  }
   0x2   :  { %v107_v2 = vcombine.high %v18_v0, %v18_v0  ;;  %v106_v3 = vcombine.low %v18_v0, %v18_v0  ;;  %v19_v5 = vld [vmem:[%s160_s2] sm:$0xff] }
   0x3   :  { %22 = vperm.xlu0 %111, %v19_v5   ;;  %v15_v8 = vld [vmem:[%s161_s1] sm:$0xf] }
   0x4   :  { %108 = vmatprep.subr.msk.bf16.mxu0 %vm44_vm0, %v107_v2  ;;  %v46_v6 = vsel %vm44_vm0, %v106_v3, 0 }
   0x5   :  { %64 = vmatpush1.bf16.msra.mxu0 %v46_v6 }
   0x6   :  { %65 = vmatprep.subr.bf16.mxu0 %v114_v4 }
   0x9   :  { %66 = vmatpush1.bf16.msra.mxu0 %v116_v7 }
   0xc   :  { %109 = vmatmul.mubr.msk.bf16.vlgmr.msra.gmra.mxu0 %vm40_vm1, %v15_v8 }
  0x7e   :  { %v23_v9 = vpop.permute.xlu0 %22 }
  0xcc   :  { %v85_v10 = vpop.f32.mrf.mxu0 }
  0xcd   :  { %v86_v11 = vadd.f32 %v85_v10, %v23_v9 }
  0xce   :  { %v87_v12 = vpop.f32.mrf.mxu0 }
  0xcf   :  { %vm92_vm2 = vcmp.ge.f32.partialorder %v86_v11, 0.0  ;;  %v94_v13 = vmul.f32 0.1, %v86_v11  ;;  %v88_v14 = vadd.f32 %v87_v12, %v23_v9 }
  0xd0   :  { %v89_v15 = vpop.f32.mrf.mxu0 }
  0xd1   :  { %v96_v16 = vsel %vm92_vm2, %v86_v11, %v94_v13  ;;  %vm93_vm3 = vcmp.ge.f32.partialorder %v88_v14, 0.0  ;;  %v95_v17 = vmul.f32 0.1, %v88_v14 }
  0xd2   :  { %98 = vst [vmem:[%s162_s3] sm:$0xff] %v96_v16  ;;  %v90_v18 = vpop.f32.mrf.mxu0 }
  0xd3   :  { %v97_v19 = vsel %vm93_vm3, %v88_v14, %v95_v17 }
  0xd4   :  { %99 = vst [vmem:[%s162_s3 + $0x8] sm:$0xff] %v97_v19 }

</bundles_post_ra>
